<compile_context>
chip_gen: v7x
topology: tpu7x:2x2x1
jax: 0.10.0
libtpu: 0.0.40
codegen_flags: <defaults>
</compile_context>

<pallas_src>
import functools
import math

import jax
import jax.numpy as jnp
import numpy as np
from jax import lax
from jax.experimental import pallas as pl
from jax.experimental.pallas import tpu as pltpu

_COMPUTE_DTYPE = jnp.bfloat16            # MXU input dtype; accumulation stays f32


# ---------------------------------------------------------------------------
# Generation-aware configuration (tile sizes, scoped-VMEM budget)
# ---------------------------------------------------------------------------
@functools.lru_cache(maxsize=1)
def _tpu_config():
    kind = ""
    try:
        kind = jax.devices()[0].device_kind.lower()
    except Exception:                                   # best-effort query
        kind = ""
    vmem_cap = None
    try:
        vmem_cap = int(pltpu.get_tpu_info().vmem_capacity_bytes)
    except Exception:                                   # best-effort query
        vmem_cap = None
    if vmem_cap is None:
        vmem_cap = (64 if ("v7" in kind or "7x" in kind) else 128) * 1024 * 1024

    # ~0.75x physical VMEM leaves headroom for Mosaic internal scratch and the
    # double-buffered BlockSpec windows (v5e/v6e -> ~96 MiB, v7x -> ~48 MiB).
    vmem_limit = int(0.75 * vmem_cap)

    small_mxu = any(g in kind for g in ("v2", "v3", "v4", "v5"))   # 128-wide MXU gens
    return dict(
        vmem_limit=vmem_limit,
        attn_tile=128 if small_mxu else 256,            # q / kv sequence tiles
        lin_row_tile=256 if vmem_cap <= 96 * 1024 * 1024 else 512,
        lin_col_tile=128 if small_mxu else 256,         # MXU-N-aligned weight col tile
    )


# ---------------------------------------------------------------------------
# Tiled linear:  y[p] = x @ W_t[p] + b[p]   (weights pre-transposed + stacked)
# ---------------------------------------------------------------------------
def _linear_kernel(x_ref, w_ref, b_ref, o_ref):
    # x: (tm, K) bf16 ; w: (K, tn) bf16 ; b: (1, tn) f32 ; o: (tm, tn)
    y = jnp.dot(x_ref[...], w_ref[...], preferred_element_type=jnp.float32)
    o_ref[...] = (y + b_ref[...]).astype(o_ref.dtype)


def _linear(x, w_stack, b_stack, *, out_dtype):
    """x: (M, K) bf16 (batch*seq collapsed); w_stack: (P, K, Ng) bf16;
    b_stack: (P, 1, Ng) f32.  Returns (P, M, Ng).  P=3 for the fused QKV projection
    (output lands directly in q/k/v-major layout), P=1 otherwise."""
    cfg = _tpu_config()
    M, K = x.shape
    P, Kw, Ng = w_stack.shape
    assert K == Kw
    tm = min(M, cfg["lin_row_tile"])
    tn = min(Ng, cfg["lin_col_tile"])
    assert M % tm == 0 and Ng % tn == 0, "row/col extents must divide their tiles"
    grid = (M // tm, P, Ng // tn)

    # NOTE: K is kept whole (weight block = (K, tn)); for very large K add a K grid axis
    # with an f32 accumulator + pl.when init/finalize.
    flops = 2 * M * K * P * Ng
    bytes_accessed = (x.size * x.dtype.itemsize
                      + (M // tm) * w_stack.size * w_stack.dtype.itemsize
                      + b_stack.size * b_stack.dtype.itemsize
                      + P * M * Ng * jnp.dtype(out_dtype).itemsize)

    return pl.pallas_call(
        _linear_kernel,
        out_shape=jax.ShapeDtypeStruct((P, M, Ng), out_dtype),
        grid_spec=pltpu.PrefetchScalarGridSpec(
            num_scalar_prefetch=0,
            grid=grid,
            in_specs=[
                pl.BlockSpec((tm, K), lambda m, p, n: (m, 0)),
                pl.BlockSpec((None, K, tn), lambda m, p, n: (p, 0, n)),
                pl.BlockSpec((None, 1, tn), lambda m, p, n: (p, 0, n)),
            ],
            out_specs=pl.BlockSpec((None, tm, tn), lambda m, p, n: (p, m, n)),
        ),
        compiler_params=pltpu.CompilerParams(
            dimension_semantics=("parallel", "parallel", "parallel"),
            vmem_limit_bytes=cfg["vmem_limit"]),
        cost_estimate=pl.CostEstimate(flops=flops, transcendentals=0,
                                      bytes_accessed=bytes_accessed),
    )(x, w_stack, b_stack)


# ---------------------------------------------------------------------------
# Flash-style attention in (B, S, H) layout; grid (B, head_group, q_tile, kv_tile)
# ---------------------------------------------------------------------------
def _flash_attn_kernel(q_ref, k_ref, v_ref, o_ref, m_sc, l_sc, acc_sc, *,
                       sm_scale, heads_per_block, d_k):
    ki = pl.program_id(3)

    @pl.when(ki == 0)
    def _():
        m_sc[...] = jnp.full(m_sc.shape, -jnp.inf, jnp.float32)
        l_sc[...] = jnp.zeros(l_sc.shape, jnp.float32)
        acc_sc[...] = jnp.zeros(acc_sc.shape, jnp.float32)

    # Short unrolled loop over the heads packed into this lane-dense (tq, G*d_k) block.
    for h in range(heads_per_block):
        lo, hi = h * d_k, (h + 1) * d_k
        # Fold sm_scale into the (tq, d_k) q slice (cheaper than scaling (tq, tk) s).
        q_h = (q_ref[:, lo:hi].astype(jnp.float32) * sm_scale).astype(q_ref.dtype)
        # Scores: contract the d_k dims directly (no in-kernel transpose).
        s = lax.dot_general(q_h, k_ref[:, lo:hi], (((1,), (1,)), ((), ())),
                            preferred_element_type=jnp.float32)            # (tq, tk)

        m_prev = m_sc[h]                                                   # (tq, 1)
        m_new = jnp.maximum(m_prev, jnp.max(s, axis=-1, keepdims=True))
        alpha = jnp.exp(m_prev - m_new)                                    # (tq, 1)
        p = jnp.exp(s - m_new)                                             # (tq, tk)
        l_sc[h] = alpha * l_sc[h] + jnp.sum(p, axis=-1, keepdims=True)
        m_sc[h] = m_new
        pv = jnp.dot(p.astype(v_ref.dtype), v_ref[:, lo:hi],
                     preferred_element_type=jnp.float32)                   # (tq, d_k)
        acc_sc[:, lo:hi] = alpha * acc_sc[:, lo:hi] + pv

    @pl.when(ki == pl.num_programs(3) - 1)
    def _():
        for h in range(heads_per_block):
            lo, hi = h * d_k, (h + 1) * d_k
            inv_l = pl.reciprocal(l_sc[h])            # exact; runs once per q tile
            o_ref[:, lo:hi] = (acc_sc[:, lo:hi] * inv_l).astype(o_ref.dtype)


def _flash_attention(q_arr, k_arr, v_arr, *, q_idx, k_idx, v_idx, num_heads,
                     sm_scale, out_dtype):
    """q/k/v arrays are (P, B, S, H); {q,k,v}_idx select the projection along axis 0.

    Heads stay packed in the H (lane) dim: grid axis g walks head groups of width
    hg = G*d_k chosen lane-dense (128, or full H when H < 128).  Output is (B, Sq, H)."""
    cfg = _tpu_config()
    _, B, Sq, H = q_arr.shape
    _, Bk, Sk, Hk = k_arr.shape
    assert (B, H) == (Bk, Hk)
    d_k = H // num_heads

    if d_k % 128 == 0:                          # a single head is already lane-dense
        hg = d_k
    elif (128 % d_k == 0) and (H % 128 == 0):
        hg = 128                                # pack 128 // d_k heads per grid step
    else:
        hg = H                                  # small models: all heads in one block
    G = hg // d_k
    n_hg = H // hg

    tq = min(Sq, cfg["attn_tile"])
    tk = min(Sk, cfg["attn_tile"])
    assert Sq % tq == 0 and Sk % tk == 0
    n_q = Sq // tq
    grid = (B, n_hg, n_q, Sk // tk)

    kernel = functools.partial(_flash_attn_kernel, sm_scale=sm_scale,
                               heads_per_block=G, d_k=d_k)

    isz = q_arr.dtype.itemsize
    flops = 4 * B * Sq * Sk * H                        # QK^T + PV over all heads
    transcendentals = B * num_heads * Sq * Sk          # exp on the score tiles
    bytes_accessed = (B * Sq * H * isz                 # q read once
                      + 2 * n_q * B * Sk * H * isz     # k, v re-streamed per q tile
                      + B * Sq * H * jnp.dtype(out_dtype).itemsize)

    return pl.pallas_call(
        kernel,
        out_shape=jax.ShapeDtypeStruct((B, Sq, H), out_dtype),
        grid_spec=pltpu.PrefetchScalarGridSpec(
            num_scalar_prefetch=0,
            grid=grid,
            in_specs=[
                pl.BlockSpec((None, None, tq, hg),
                             lambda b, g, qi, ki: (q_idx, b, qi, g)),
                pl.BlockSpec((None, None, tk, hg),
                             lambda b, g, qi, ki: (k_idx, b, ki, g)),
                pl.BlockSpec((None, None, tk, hg),
                             lambda b, g, qi, ki: (v_idx, b, ki, g)),
            ],
            out_specs=pl.BlockSpec((None, tq, hg),
                                   lambda b, g, qi, ki: (b, qi, g)),
            scratch_shapes=[
                pltpu.VMEM((G, tq, 1), jnp.float32),   # running max m (per head)
                pltpu.VMEM((G, tq, 1), jnp.float32),   # running sum l (per head)
                pltpu.VMEM((tq, hg), jnp.float32),     # un-normalized output accumulator
            ],
        ),
        compiler_params=pltpu.CompilerParams(
            dimension_semantics=("parallel", "parallel", "parallel", "arbitrary"),
            vmem_limit_bytes=cfg["vmem_limit"]),
        cost_estimate=pl.CostEstimate(flops=flops, transcendentals=transcendentals,
                                      bytes_accessed=bytes_accessed),
    )(q_arr, k_arr, v_arr)


# ---------------------------------------------------------------------------
# Full MHA wrapper
# ---------------------------------------------------------------------------
def multi_head_attention(xq, xk, xv, params, num_heads: int):
    """Pallas MHA.  xq/xk/xv: (B, S, H) float32.  Returns (B, S, H) in xq.dtype."""
    B, S, H = xq.shape
    assert H % num_heads == 0
    d_k = H // num_heads
    wq, bq, wk, bk, wv, bv, wo, bo = params
    cd = _COMPUTE_DTYPE

    # PyTorch Linear computes y = x @ W.T + b: pre-transpose + stack the weights ONCE in
    # the wrapper (parameter-side work, tiny next to activation traffic) so the kernels
    # never transpose; matmul operands are bf16 with f32 accumulation.
    def w_stack(*ws):
        return jnp.stack([w.T for w in ws], axis=0).astype(cd)            # (P, K, N)

    def b_stack(*bs):
        return jnp.stack([b.reshape(1, -1) for b in bs], axis=0).astype(jnp.float32)

    xq2 = xq.reshape(B * S, H).astype(cd)

    if (xk is xq) and (xv is xq):
        # Self-attention: one fused projection whose q/k/v grid axis writes the output
        # directly as (3, B*S, H) -> free reshape to (3, B, S, H).  The flash kernel
        # picks q/k/v via the leading BlockSpec index (no HBM slices, no transposes).
        qkv = _linear(xq2, w_stack(wq, wk, wv), b_stack(bq, bk, bv), out_dtype=cd)
        qkv = qkv.reshape(3, B, S, H)
        q_arr = k_arr = v_arr = qkv
        qi, ki, vi = 0, 1, 2
    else:
        Sk = xk.shape[1]
        xk2 = xk.reshape(B * Sk, H).astype(cd)
        xv2 = xv.reshape(B * Sk, H).astype(cd)
        q_arr = _linear(xq2, w_stack(wq), b_stack(bq), out_dtype=cd).reshape(1, B, S, H)
        k_arr = _linear(xk2, w_stack(wk), b_stack(bk), out_dtype=cd).reshape(1, B, Sk, H)
        v_arr = _linear(xv2, w_stack(wv), b_stack(bv), out_dtype=cd).reshape(1, B, Sk, H)
        qi = ki = vi = 0

    # Attention stays in (B, S, H) layout; heads addressed by the head-group grid axis,
    # context written back as a lane-dense (B, S, H) slab feeding the out-projection.
    ctx = _flash_attention(q_arr, k_arr, v_arr, q_idx=qi, k_idx=ki, v_idx=vi,
                           num_heads=num_heads, sm_scale=1.0 / math.sqrt(d_k),
                           out_dtype=cd)                                   # (B, S, H)

    out = _linear(ctx.reshape(B * S, H), w_stack(wo), b_stack(bo),
                  out_dtype=xq.dtype)                                      # (1, B*S, H)
    return out.reshape(B, S, H)


# ---------------------------------------------------------------------------
# Pure-JAX fp32 reference + test harness
# ---------------------------------------------------------------------------
def _reference_mha(xq, xk, xv, params, num_heads: int):
    B, S, H = xq.shape
    d_k = H // num_heads
    wq, bq, wk, bk, wv, bv, wo, bo = params

    def lin(x, w, b):
        return x @ w.T + b

    def split(x):
        return x.reshape(B, -1, num_heads, d_k).transpose(0, 2, 1, 3)

    q, k, v = split(lin(xq, wq, bq)), split(lin(xk, wk, bk)), split(lin(xv, wv, bv))
    scores = jnp.einsum("bhqd,bhkd->bhqk", q, k) / math.sqrt(d_k)
    p = jax.nn.softmax(scores, axis=-1)
    ctx = jnp.einsum("bhqk,bhkd->bhqd", p, v)
    ctx = ctx.transpose(0, 2, 1, 3).reshape(B, S, H)
    return lin(ctx, wo, bo)


def _init_linear(key, out_dim, in_dim):
    kw, kb = jax.random.split(key)
    bound = 1.0 / math.sqrt(in_dim)
    w = jax.random.uniform(kw, (out_dim, in_dim), jnp.float32, -bound, bound)
    b = jax.random.uniform(kb, (out_dim,), jnp.float32, -bound, bound)
    return w, b


if __name__ == "__main__":
    B, S, H = 2, 8, 32
    num_heads = 4

    root = jax.random.PRNGKey(0)
    k_x, k_k, k_v, k_wq, k_wk, k_wv, k_wo = jax.random.split(root, 7)

    wq, bq = _init_linear(k_wq, H, H)
    wk, bk = _init_linear(k_wk, H, H)
    wv, bv = _init_linear(k_wv, H, H)
    wo, bo = _init_linear(k_wo, H, H)
    params = (wq, bq, wk, bk, wv, bv, wo, bo)

    # bf16 matmuls (incl. bf16-scaled q) vs fp32 reference -> relaxed tolerance.
    TOL = dict(rtol=2.5e-2, atol=2.5e-2)

    # 1) self-attention (fused (3,K,H) QKV projection + shared-array flash inputs)
    x = jax.random.normal(k_x, (B, S, H), jnp.float32)
    out_self = jax.block_until_ready(multi_head_attention(x, x, x, params, num_heads))
    ref_self = _reference_mha(x, x, x, params, num_heads)
    np.testing.assert_allclose(np.asarray(out_self), np.asarray(ref_self), **TOL)

    # 2) cross-attention (separate q/k/v projection path)
    xk_in = jax.random.normal(k_k, (B, S, H), jnp.float32)
    xv_in = jax.random.normal(k_v, (B, S, H), jnp.float32)
    out_cross = jax.block_until_ready(
        multi_head_attention(x, xk_in, xv_in, params, num_heads))
    ref_cross = _reference_mha(x, xk_in, xv_in, params, num_heads)
    np.testing.assert_allclose(np.asarray(out_cross), np.asarray(ref_cross), **TOL)

    print("KERNEL_OK")
</pallas_src>

<mosaic_0001>
module attributes {stable_mosaic.version = 11 : i64} {
  func.func @_linear_kernel(%arg0: i32, %arg1: i32, %arg2: i32, %arg3: memref<16x32xbf16, #tpu.memory_space<vmem>>, %arg4: memref<1x32x32xbf16, #tpu.memory_space<vmem>>, %arg5: memref<1x1x32xf32, #tpu.memory_space<vmem>>, %arg6: memref<1x16x32xbf16, #tpu.memory_space<vmem>>) attributes {dimension_semantics = [#tpu.dimension_semantics<parallel>, #tpu.dimension_semantics<parallel>, #tpu.dimension_semantics<parallel>], iteration_bounds = array<i64: 1, 3, 1>, scalar_prefetch = 0 : i64, scratch_operands = 0 : i64, tpu.core_type = #tpu.core_type<tc>, window_params = [{transform_indices = @transform_0, window_bounds = array<i64: 16, 32>}, {transform_indices = @transform_1, window_bounds = array<i64: 1, 32, 32>}, {transform_indices = @transform_2, window_bounds = array<i64: 1, 1, 32>}, {transform_indices = @transform_3, window_bounds = array<i64: 1, 16, 32>}]} {
    %c0 = arith.constant 0 : index
    %c0_0 = arith.constant 0 : index
    %0 = vector.load %arg3[%c0, %c0_0] : memref<16x32xbf16, #tpu.memory_space<vmem>>, vector<16x32xbf16>
    %c0_1 = arith.constant 0 : index
    %c0_2 = arith.constant 0 : index
    %c0_3 = arith.constant 0 : index
    %1 = vector.load %arg4[%c0_1, %c0_2, %c0_3] : memref<1x32x32xbf16, #tpu.memory_space<vmem>>, vector<1x32x32xbf16>
    %2 = vector.shape_cast %1 : vector<1x32x32xbf16> to vector<32x32xbf16>
    %cst = arith.constant dense<0.000000e+00> : vector<16x32xf32>
    %3 = tpu.matmul %0, %2, %cst {dimension_numbers = #tpu.dot_dimension_numbers<[1], [0], [0], [1], [0, 0, 1, 1], [], []>} : vector<16x32xbf16>, vector<32x32xbf16>, vector<16x32xf32> -> vector<16x32xf32>
    %c0_4 = arith.constant 0 : index
    %c0_5 = arith.constant 0 : index
    %c0_6 = arith.constant 0 : index
    %4 = vector.load %arg5[%c0_4, %c0_5, %c0_6] : memref<1x1x32xf32, #tpu.memory_space<vmem>>, vector<1x1x32xf32>
    %5 = vector.shape_cast %4 : vector<1x1x32xf32> to vector<1x32xf32>
    %6 = vector.broadcast %5 : vector<1x32xf32> to vector<16x32xf32>
    %7 = arith.addf %3, %6 : vector<16x32xf32>
    %8 = arith.truncf %7 : vector<16x32xf32> to vector<16x32xbf16>
    %c0_7 = arith.constant 0 : index
    %c0_8 = arith.constant 0 : index
    %c0_9 = arith.constant 0 : index
    %9 = vector.load %arg6[%c0_7, %c0_8, %c0_9] : memref<1x16x32xbf16, #tpu.memory_space<vmem>>, vector<1x16x32xbf16>
    %10 = vector.shape_cast %9 : vector<1x16x32xbf16> to vector<16x32xbf16>
    %11 = vector.shape_cast %8 : vector<16x32xbf16> to vector<1x16x32xbf16>
    tpu.vector_store %arg6[%c0_7, %c0_8, %c0_9], %11 {strides = array<i32>} : memref<1x16x32xbf16, #tpu.memory_space<vmem>>, vector<1x16x32xbf16>,
    return
  }
  func.func @transform_0(%arg0: i32, %arg1: i32, %arg2: i32) -> (i32, i32) {
    %c0_i32 = arith.constant 0 : i32
    %c0_i32_0 = arith.constant 0 : i32
    return %arg0, %c0_i32 : i32, i32
  }
  func.func @transform_1(%arg0: i32, %arg1: i32, %arg2: i32) -> (i32, i32, i32) {
    %c0_i32 = arith.constant 0 : i32
    %c0_i32_0 = arith.constant 0 : i32
    return %arg1, %c0_i32, %arg2 : i32, i32, i32
  }
  func.func @transform_2(%arg0: i32, %arg1: i32, %arg2: i32) -> (i32, i32, i32) {
    %c0_i32 = arith.constant 0 : i32
    %c0_i32_0 = arith.constant 0 : i32
    return %arg1, %c0_i32, %arg2 : i32, i32, i32
  }
  func.func @transform_3(%arg0: i32, %arg1: i32, %arg2: i32) -> (i32, i32, i32) {
    %c0_i32 = arith.constant 0 : i32
    return %arg1, %arg0, %arg2 : i32, i32, i32
  }
}

</mosaic_0001>

<bundles_post_ra>
// kernel: tpu_custom_call.1
= control target key start
LH: loop header
LB: loop body
LE: loop exit
PB: predicated region body
PF: predicated region fallthrough
CT: control target
= control target key end

     0   :  { %s1096_s0 = inlined_call_operand.hbm [shape: bf16[16,32], index: 0, kind: input, shape index: {}]   ;;  %s1097_s1 = inlined_call_operand.hbm [shape: bf16[3,32,32], index: 1, kind: input, shape index: {}]   ;;  %s1098_s2 = inlined_call_operand.hbm [shape: f32[3,1,32], index: 2, kind: input, shape index: {}]   ;;  %s1099_s3 = inlined_call_operand.hbm [shape: bf16[3,16,32], index: 3, kind: output, shape index: {}]  }
   0x1   :  { %1107 = sst [smem:[#allocation12_spill]] %s1097_s1 }
   0x2   :  { %8 = vsyncpa [#allocation3], 0 }
   0x3   :  { %9 = vsyncpa [#allocation6], 0 }
   0x4   :  { %11 = vsyncpa [#allocation6 + $0x1], 0 }
   0x5   :  { %12 = vsyncpa [#allocation4], 0 }
   0x6   :  { %14 = vsyncpa [#allocation4 + $0x1], 0  ;;  %s833_s12 = smov 0   ;;  %s835_s13 = smov 0  }
   0x7   :  { %s837_s14 = smov 0   ;;  %s839_s15 = smov 0  }
   0x8   :  { %s841_s16 = smov 0   ;;  %s843_s17 = smov 0  }
   0x9 LB: > { %s35_s18 = sadd.s32 1, %s797_s16  ;;  %s74_s19 = sadd.s32 1, %s789_s14  ;;  %s801_s17 = sphi %s843_s17, %s20_s17   ;;  %s797_s16 = sphi %s841_s16, %s1129_s16   ;;  %s793_s15 = sphi %s839_s15, %s1128_s15   ;;  %s789_s14 = sphi %s837_s14, %s1127_s14   ;;  %s785_s13 = sphi %s835_s13, %s1126_s13   ;;  %s781_s12 = sphi %s833_s12, %s1125_s12  }
   0xa   : > { %p37_p0 = scmp.ge.s32.totalorder %s35_s18, 3  ;;  %p81_p1 = scmp.ne.s32.totalorder %s789_s14, %s785_s13 }
   0xb   : > { %p82_p2 = scmp.eq.s32.totalorder %s801_s17, 0  ;;  %p566_p5 = scmp.lt.s32.totalorder %s801_s17, 3 }
   0xc   : > { %s1131_s18 = smov (%p37_p0, %s35_s18), 0  ;;  %s185_s22 = sand.u32 1, %s801_s17  }
   0xd   : > { %p873_p3 = por %p82_p2, %p81_p1  ;;  %s69_s21 = ssub.s32 %s797_s16, %s1131_s18 }
   0xe   : > { %p72_p4 = scmp.eq.s32.totalorder %s69_s21, 0  ;;  %s187_s23 = sand.u32 1, %s789_s14  }
   0xf   : > { %s505_s25 = sshll.u32 %s187_s23, 4  ;;  %s525_s26 = sshll.u32 %s797_s16, 8 }
  0x10   : > { %s883_s24 = scalar_select %p72_p4, %s789_s14, %s74_s19  }
  0x11   : > { %s1109_s1 = sld [smem:[#allocation12_spill]]  ;;  %s189_s30 = scalar_lea.vmem [#allocation5], %s505_s25 }
  0x12   : > { %s197_s4 = sshll.u32 %s189_s30, 4  ;;  %p897_p6 = pnand %p566_p5, %p873_p3  ;;  %s893_s4 = int_to_ptr.vmem [resolvable:$true] %s197_s4 }
  0x13   : > { %s901_s6 = scalar_lea.sflag [#allocation6], %s185_s22 }
  0x14   : > { %p629_p8 = pneg %p897_p6 }
  0x17   : > { %s891_s29 = scalar_lea.hbm %s1109_s1, %s525_s26  ;;  %s632_s10 = scalar_lea.hbm %s1109_s1, 768 }
  0x18   : > { %s627_s7 = scalar_lea.hbm %s891_s29, 256  ;;  %p633_p11 = scmp.lt.u32.totalorder %s891_s29, %s1109_s1 }
  0x19   : > { %p628_p7 = scmp.ne.s32.totalorder %s891_s29, %s627_s7  ;;  %p634_p12 = scmp.lt.u32.totalorder %s632_s10, %s627_s7 }
  0x1a   : > { %p636_p0 = scmp.lt.u32.totalorder %s627_s7, %s891_s29 }
  0x1b   : > { %p630_p9 = pnand %p629_p8, %p628_p7  ;;  %p635_p13 = por %p634_p12, %p633_p11 }
  0x1d   : > { %p631_p10 = pneg %p630_p9  ;;  %p637_p2 = por %p636_p0, %p635_p13 }
  0x1f   : > { %p638_p3 = pnand %p637_p2, %p631_p10 }
  0x21   : > { %641 = shalt.err (!%p638_p3)
}
  0x22   : > { %s642_s20 = scalar_lea.vmem %s893_s4, 256  ;;  %s803_s21 = smov [#allocation5]  }
  0x23   : > { %p643_p4 = scmp.ne.s32.totalorder %s893_s4, %s642_s20  ;;  %s647_s22 = sshll.u32 %s803_s21, 4  ;;  %s648_s22 = int_to_ptr.vmem [resolvable:$false] %s647_s22 }
  0x24   : > { %s649_s25 = scalar_lea.vmem %s648_s22, 512  ;;  %p650_p9 = scmp.lt.s32.totalorder %s893_s4, %s648_s22 }
  0x25   : > { %p645_p5 = pnand %p643_p4, %p629_p8  ;;  %p651_p11 = scmp.lt.s32.totalorder %s649_s25, %s642_s20 }
  0x27   : > { %p646_p7 = pneg %p645_p5  ;;  %p652_p12 = por %p651_p11, %p650_p9 }
  0x29   : > { %p653_p13 = pnand %p652_p12, %p646_p7 }
  0x2b   : > { %656 = shalt.err (!%p653_p13)
}
  0x2c   : > { %s1100_s26 = smov 64   ;;  %s1101_s27 = smov 4  }
  0x2d   : > { %557 = dma.hbm_to_vmem [thread:$0]  (!%p897_p6), %s891_s29, 256, %s893_s4, %s901_s6, %s1100_s26, %s1100_s26, %s1101_s27  }
  0x2e   : > { %s933_s28 = sadd.s32 4294967295, %s801_s17   ;;  %s501_s30 = sadd.s32 4294967294, %s801_s17  }
  0x2f   : > { %p87_p10 = scmp.ne.s32.totalorder %s785_s13, %s781_s12  ;;  %p1102_p0 = scmp.eq.s32.totalorder %s933_s28, 0 }
  0x30   : > { %p143_p2 = scmp.eq.s32.totalorder %s933_s28, 2  ;;  %p149_p3 = scmp.eq.s32.totalorder %s501_s30, 2 }
  0x31   : > { %p502_p4 = scmp.ge.s32.totalorder %s801_s17, 1  ;;  %p943_p5 = por %p1102_p0, %p87_p10 }
  0x32   : > { %p950_p7 = por %p143_p2, %p81_p1  ;;  %p954_p9 = por %p149_p3, %p87_p10 }
  0x33   : > { %s1111_s7 = scalar_select %p943_p5, 1, 0 }
  0x34   : > { %s1112_s29 = scalar_select %p950_p7, 1, 0 }
  0x35   : > { %s1113_s4 = scalar_select %p954_p9, 1, 0 }
  0x36   : > { %p156_p11 = scmp.lt.s32.totalorder %s801_s17, 4  ;;  %s806_s9 = smov [#allocation2]  }
  0x37   : > { %s171_s10 = sshll.u32 %s806_s9, 4  ;;  %s508_s11 = sshll.u32 %s797_s16, 4  ;;  %s963_s10 = int_to_ptr.vmem [resolvable:$true] %s171_s10 }
  0x38   : > { %p959_p12 = pnand %p502_p4, %p156_p11  ;;  %s971_s21 = scalar_lea.hbm %s1098_s2, %s508_s11 }
  0x39   : > { %s210_s22 = scalar_lea.vmem [#allocation7], %s187_s23  ;;  %s657_s9 = scalar_lea.hbm %s971_s21, 16 }
  0x3a   : > { %s1114_s8 = scalar_select %p959_p12, 1, 0 }
  0x3b   : > { %p550_p1 = pneg %p959_p12  ;;  %s218_s25 = sshll.u32 %s210_s22, 4  ;;  %s219_s25 = int_to_ptr.vmem [resolvable:$true] %s218_s25 }
  0x3c   : > { %p658_p10 = scmp.ne.s32.totalorder %s971_s21, %s657_s9  ;;  %s662_s20 = scalar_lea.hbm %s1098_s2, 48 }
  0x3d   : > { %p977_p13 = pnand %p550_p1, %p1102_p0  ;;  %p663_p4 = scmp.lt.u32.totalorder %s971_s21, %s1098_s2 }
  0x3e   : > { %p660_p2 = pnand %p658_p10, %p629_p8  ;;  %p664_p11 = scmp.lt.u32.totalorder %s662_s20, %s657_s9 }
  0x3f   : > { %s1115_s30 = scalar_select %p977_p13, 1, 0 }
  0x40   : > { %p661_p3 = pneg %p660_p2  ;;  %p665_p1 = por %p664_p11, %p663_p4 }
  0x41   : > { %p666_p0 = scmp.lt.u32.totalorder %s657_s9, %s971_s21 }
  0x43   : > { %p667_p9 = por %p666_p0, %p665_p1 }
  0x45   : > { %p668_p7 = pnand %p667_p9, %p661_p3 }
  0x47   : > { %671 = shalt.err (!%p668_p7)
}
  0x48   : > { %s672_s23 = scalar_lea.vmem %s219_s25, 16  ;;  %s807_s22 = smov [#allocation7]  }
  0x49   : > { %p673_p5 = scmp.ne.s32.totalorder %s219_s25, %s672_s23  ;;  %s677_s11 = sshll.u32 %s807_s22, 4  ;;  %s678_s11 = int_to_ptr.vmem [resolvable:$false] %s677_s11 }
  0x4a   : > { %s679_s19 = scalar_lea.vmem %s678_s11, 32  ;;  %p680_p12 = scmp.lt.s32.totalorder %s219_s25, %s678_s11 }
  0x4b   : > { %p675_p10 = pnand %p673_p5, %p629_p8  ;;  %p681_p13 = scmp.lt.s32.totalorder %s679_s19, %s672_s23 }
  0x4d   : > { %p676_p2 = pneg %p675_p10  ;;  %p682_p4 = por %p681_p13, %p680_p12 }
  0x4f   : > { %p683_p11 = pnand %p682_p4, %p676_p2 }
  0x51   : > { %686 = shalt.err (!%p683_p11)
}
  0x52   : > { %560 = dma.hbm_to_vmem [thread:$0]  (!%p897_p6), %s971_s21, 16, %s219_s25, %s901_s6  }
  0x53   : > { %s687_s9 = scalar_lea.hbm %s1096_s0, 128  ;;  %p1116_p0 = scmp.ne.s32.totalorder %s1115_s30, 0 }
  0x54   : > { %p688_p8 = scmp.ne.s32.totalorder %s1096_s0, %s687_s9  ;;  %p694_p12 = scmp.lt.u32.totalorder %s687_s9, %s1096_s0 }
  0x55   : > { %p689_p5 = pneg %p1116_p0 }
  0x57   : > { %p690_p7 = pnand %p689_p5, %p688_p8 }
  0x59   : > { %p691_p9 = pneg %p690_p7 }
  0x5b   : > { %p696_p13 = pnand %p694_p12, %p691_p9 }
  0x5d   : > { %699 = shalt.err (!%p696_p13)
}
  0x5e   : > { %s700_s5 = scalar_lea.vmem %s963_s10, 128  ;;  %p708_p10 = scmp.lt.s32.totalorder %s963_s10, %s963_s10 }
  0x5f   : > { %p701_p6 = scmp.ne.s32.totalorder %s963_s10, %s700_s5  ;;  %p709_p2 = scmp.lt.s32.totalorder %s700_s5, %s700_s5 }
  0x61   : > { %p703_p3 = pnand %p701_p6, %p689_p5  ;;  %p710_p4 = por %p709_p2, %p708_p10 }
  0x63   : > { %p704_p1 = pneg %p703_p3 }
  0x65   : > { %p711_p11 = pnand %p710_p4, %p704_p1 }
  0x67   : > { %714 = shalt.err (!%p711_p11)
}
  0x68   : > { %s1117_s1 = smov 4   ;;  %s1118_s6 = smov 64  }
  0x69   : > { %553 = dma.hbm_to_vmem [thread:$0]  (!%p1116_p0), %s1096_s0, 128, %s963_s10, [#allocation3], %s1118_s6, %s1118_s6, %s1117_s1  }
  0x6a   : > { %p1119_p8 = scmp.ne.s32.totalorder %s1114_s8, 0 }
  0x6b   : > { %p1120_p5 = scmp.eq.s32.totalorder (!%p1119_p8), %s933_s28, 0 }
  0x6c   : > { %227 = sbr.rel (%p1119_p8) target bundleno = 363 (0x16b), region = 32 }
  0x73   : > { %768 = dma.done.wait (%p1120_p5), [#allocation3], 128   ;;  %p1121_p7 = pmov %p1120_p5 }
  0x74   : > { %s233_s30 = sand.u32 1, %s933_s28   ;;  %s1033_s11 = sand.u32 1, %s785_s13  }
  0x75   : > { %770 = vsyncadd (%p1121_p7), [#allocation3], 4294967168  ;;  %s511_s19 = sshll.u32 %s1033_s11, 4  ;;  %s234_s26 = scalar_lea.sflag [#allocation6], %s233_s30 }
  0x76   : > { %s237_s27 = scalar_lea.vmem [#allocation5], %s511_s19  ;;  %p1122_p0 = scmp.ne.s32.totalorder %s1111_s7, 0 }
  0x78   : > { %772 = dma.done.wait (%p1122_p0), %s234_s26, 272  }
  0x79   : > { %774 = vsyncadd (%p1122_p0), %s234_s26, 4294967024  ;;  %v808_v0 = vmov 0.0   ;;  %vm809_vm0 = vmmov 0   ;;  %v624_v1 = vld [vmem:[%s237_s27] sm:$0xff]   ;;  %v625_v2 = vld [vmem:[%s237_s27 + $0x8] sm:$0xff]   ;;  %vm305_vm1 = vcmask 261120  }
  0x7a   : > { %532 = vmatprep.subr.bf16.mxu0 %v808_v0  ;;  %536 = vmatprep.mubr.msk.bf16.mxu0 %vm809_vm0, %v808_v0  ;;  %v626_v3 = vld [vmem:[#allocation2] sm:$0xff]   ;;  %s512_s28 = sshll.u32 %s1033_s11, 3  ;;  %s245_s8 = scalar_lea.vmem [#allocation7], %s1033_s11  ;;  %vm358_vm2 = vcmask 257024  }
  0x7b   : > { %533 = vmatpush3.bf16.msra.mxu0 %v624_v1  ;;  %v513_v4 = vld [vmem:[%s245_s8] ss:$0 sm:$0xff]  ;;  %s271_s7 = scalar_lea.vmem [#allocation8], %s512_s28  ;;  %s528_s9 = sshll.u32 %s793_s15, 7 }
  0x7c   : > { %534 = vmatprep.subr.bf16.mxu0 %v808_v0  ;;  %s378_s10 = sshll.u32 %s271_s7, 4  ;;  %s1046_s22 = scalar_lea.hbm %s1099_s3, %s528_s9  ;;  %s1048_s10 = int_to_ptr.vmem [resolvable:$true] %s378_s10 }
  0x7d   : > { %s362_s5 = scalar_lea.sflag [#allocation4], %s1033_s11  ;;  %s715_s15 = scalar_lea.vmem %s1048_s10, 128 }
  0x7e   : > { %p716_p9 = scmp.ne.s32.totalorder %s1048_s10, %s715_s15  ;;  %p1123_p12 = scmp.ne.s32.totalorder %s1112_s29, 0 }
  0x7f   : > { %535 = vmatpush3.bf16.msra.mxu0 %v625_v2  ;;  %s810_s1 = smov [#allocation8]  }
  0x80   : > { %p717_p13 = pnand %p716_p9, %p1123_p12  ;;  %s719_s6 = sshll.u32 %s810_s1, 4  ;;  %s720_s6 = int_to_ptr.vmem [resolvable:$false] %s719_s6 }
  0x81   : > { %s721_s21 = scalar_lea.vmem %s720_s6, 256  ;;  %p722_p3 = scmp.lt.s32.totalorder %s1048_s10, %s720_s6 }
  0x82   : > { %537 = vmatmul.mubr.msk.bf16.vlgmr.msra.gmra.mrb[0].mxu0 %vm305_vm1, %v626_v3  ;;  %p718_p6 = pneg %p717_p13  ;;  %p723_p1 = scmp.lt.s32.totalorder %s721_s21, %s715_s15 }
  0x84   : > { %p724_p10 = por %p723_p1, %p722_p3 }
  0x86   : > { %p725_p2 = pnand %p724_p10, %p718_p6 }
 0x155   : > { %v343_v5 = vpop.f32.mrb[0].mxu0 }
 0x156   : > { %v344_v6 = vadd.f32 %v513_v4, %v343_v5  ;;  %v538_v7 = vpop.f32.mrb[1].mxu0 }
 0x157   : > { %v346_v8 = vpop.f32.mrb[2].mxu0 }
 0x158   : > { %v526_v9 = vpack.c.bf16 %v344_v6, %v344_v6  ;;  %v347_v10 = vadd.f32 %v513_v4, %v346_v8  ;;  %v539_v11 = vpop.f32.mrb[3].mxu0 }
 0x15a   : > { %359 = vst.msk [vmem:[%s271_s7] sm:$0xf] %vm358_vm2, %v526_v9  ;;  %v527_v12 = vpack.c.bf16 %v347_v10, %v347_v10 }
 0x15c   : > { %360 = vst.msk [vmem:[%s271_s7 + $0x4] sm:$0xf] %vm358_vm2, %v527_v12 }
 0x15d   : > { %728 = shalt.err (!%p725_p2)
}
 0x15e   : > { %s729_s25 = scalar_lea.hbm %s1046_s22, 128  ;;  %s733_s26 = scalar_lea.hbm %s1099_s3, 384 }
 0x15f   : > { %p730_p4 = scmp.ne.s32.totalorder %s1046_s22, %s729_s25  ;;  %p734_p5 = scmp.lt.u32.totalorder %s1046_s22, %s1099_s3 }
 0x160   : > { %p735_p7 = scmp.lt.u32.totalorder %s733_s26, %s729_s25  ;;  %p737_p9 = scmp.lt.u32.totalorder %s729_s25, %s1046_s22 }
 0x161   : > { %p731_p11 = pnand %p730_p4, %p1123_p12 }
 0x162   : > { %p736_p0 = por %p735_p7, %p734_p5 }
 0x163   : > { %p732_p8 = pneg %p731_p11 }
 0x164   : > { %p738_p13 = por %p737_p9, %p736_p0 }
 0x166   : > { %p739_p6 = pnand %p738_p13, %p732_p8 }
 0x168   : > { %742 = shalt.err (!%p739_p6)
}
 0x169   : > { %s811_s8 = smov 64   ;;  %s812_s7 = smov 4  }
 0x16a   : > { %548 = dma.vmem_to_hbm [thread:$0]  (%p1123_p12), %s1048_s10, 128, %s1046_s22, %s362_s5, %s811_s8, %s811_s8, %s812_s7  }
 0x16b PF: > { %p568_p3 = scmp.ge.s32.totalorder %s801_s17, 2  ;;  %s393_s9 = sand.u32 1, %s781_s12  }
 0x16c   : > { %p1124_p1 = scmp.ne.s32.totalorder %s1113_s4, 0  ;;  %s394_s20 = scalar_lea.sflag [#allocation4], %s393_s9 }
 0x16e   : > { %p562_p10 = pnand %p568_p3, %p1124_p1 }
 0x170   : > { %776 = dma.done.wait (!%p562_p10), %s394_s20, 128  }
 0x171   : > { %778 = vsyncadd (!%p562_p10), %s394_s20, 4294967168  ;;  %s20_s17 = sadd.s32 1, %s801_s17   ;;  %s1125_s12 = smov %s785_s13 }
 0x172   : > { %p17_p2 = scmp.ge.s32.totalorder %s20_s17, 5   ;;  %s1126_s13 = smov %s789_s14 }
 0x173   : > { %s1127_s14 = smov %s883_s24  ;;  %s1128_s15 = smov %s797_s16 }
 0x174   : > { %s1129_s16 = smov %s1131_s18  ;;  %19 = sbr.rel (!%p17_p2) target bundleno = 9 (0x9), region = 94 }
 0x17b   :  { %399 = vsyncpa [#allocation3], 1 }
 0x17c   :  { %401 = vsyncpa [#allocation3 + $0x1], 1 }
 0x17d   :  { %402 = vsyncpa [#allocation6], 1 }
 0x17e   :  { %404 = vsyncpa [#allocation6 + $0x1], 1 }
 0x17f   :  { %405 = vsyncpa [#allocation4], 1 }
 0x180   :  { %407 = vsyncpa [#allocation4 + $0x1], 1 }

</bundles_post_ra>
